<compile_context>
chip_gen: v6e
topology: v6e:2x2x1
jax: 0.10.0
libtpu: 0.0.40
codegen_flags: <defaults>
</compile_context>

<pallas_src>
import jax
import jax.numpy as jnp
from jax.experimental import pallas as pl
from jax.experimental.pallas import tpu as pltpu

IN_FEATURES = 28 * 28      # 784
HIDDEN = 100
OUT_CLASSES = 10

HID_PAD = 128              # 100 -> 128 (zero-padded; ReLU(0)=0 contributes nothing)
OUT_PAD = 128              # 10  -> 128 (padded logit lanes get a -1e30 bias -> exp()=0)
NEG_FILL = -1e30           # finite "minus infinity": softmax-safe and NaN-proof


def _round_up(n, m):
    return ((n + m - 1) // m) * m


def _pick_tm(batch, cap=1024):
    """Batch tile: >=2 grid steps whenever B > 8 (v7x megacore), capped at 1024
    rows (VMEM-safe at v5e's default scoped limit), always a multiple of 8."""
    return max(8, min(cap, _round_up(pl.cdiv(batch, 2), 8)))


def fashion_net_kernel(x_ref, w1_ref, b1_ref, w2_ref, b2_ref, o_ref):
    # fc1 + ReLU: bf16 MXU inputs (cast in-kernel), f32 accumulation, f32 elementwise.
    x = x_ref[...].astype(jnp.bfloat16)                               # (TM, 784)
    h = jnp.dot(x, w1_ref[...], preferred_element_type=jnp.float32)   # (TM, 128) f32
    h = jnp.maximum(h + b1_ref[...], 0.0)

    # fc2: padded class lanes carry a -1e30 bias -> exp() underflows to 0 below.
    logits = jnp.dot(h.astype(jnp.bfloat16), w2_ref[...],
                     preferred_element_type=jnp.float32) + b2_ref[...]  # (TM, 128) f32

    # Numerically-stable softmax over dim=1; exact normalization (rows sum to 1).
    m = jnp.max(logits, axis=-1, keepdims=True)
    e = jnp.exp(logits - m)
    denom = jnp.sum(e, axis=-1, keepdims=True)
    o_ref[...] = (e / denom).astype(o_ref.dtype)


def fashion_net_forward(x, w1p, b1p, w2p, b2p, *, tm_cap=1024, out_dtype=jnp.bfloat16):
    """x: (B, 784) float32 or bfloat16.  w1p/b1p/w2p/b2p: padded params from pad_params().

    Returns (B, 10) softmax probabilities in `out_dtype`.
    """
    B = x.shape[0]
    TM = _pick_tm(B, tm_cap)
    grid = (pl.cdiv(B, TM),)          # partial last block: per-row garbage, sliced off

    flops = 2 * B * (IN_FEATURES * HID_PAD + HID_PAD * OUT_PAD)
    bytes_accessed = (x.size * x.dtype.itemsize
                      + w1p.size * 2 + w2p.size * 2
                      + b1p.size * 4 + b2p.size * 4
                      + B * OUT_PAD * jnp.dtype(out_dtype).itemsize)

    out = pl.pallas_call(
        fashion_net_kernel,
        out_shape=jax.ShapeDtypeStruct((B, OUT_PAD), out_dtype),
        grid=grid,
        in_specs=[
            pl.BlockSpec((TM, IN_FEATURES), lambda i: (i, 0)),       # x: tiled over batch
            pl.BlockSpec((IN_FEATURES, HID_PAD), lambda i: (0, 0)),  # w1: VMEM-resident
            pl.BlockSpec((1, HID_PAD), lambda i: (0, 0)),            # b1
            pl.BlockSpec((HID_PAD, OUT_PAD), lambda i: (0, 0)),      # w2
            pl.BlockSpec((1, OUT_PAD), lambda i: (0, 0)),            # b2 (-1e30 pad lanes)
        ],
        out_specs=pl.BlockSpec((TM, OUT_PAD), lambda i: (i, 0)),     # lane-dense bf16 out
        compiler_params=pltpu.CompilerParams(
            dimension_semantics=("parallel",)),                      # megacore on v7x
        cost_estimate=pl.CostEstimate(
            flops=flops,
            transcendentals=B * OUT_PAD,
            bytes_accessed=bytes_accessed),
    )(x, w1p, b1p, w2p, b2p)

    # Note: under jit this slice fuses into the consumer; callers that can accept
    # the 128-lane padded output should take `out` directly and skip the copy.
    return out[:B, :OUT_CLASSES]


def init_params(key, hidden_size=HIDDEN):
    """Deterministic init mirroring nn.Linear's U(-1/sqrt(fan_in), 1/sqrt(fan_in)).

    Returned in (in, out) layout (PyTorch stores (out, in) and does x @ W.T).
    """
    k1, k2, k3, k4 = jax.random.split(key, 4)
    bound1 = 1.0 / jnp.sqrt(jnp.float32(IN_FEATURES))
    bound2 = 1.0 / jnp.sqrt(jnp.float32(hidden_size))
    w1 = jax.random.uniform(k1, (IN_FEATURES, hidden_size), jnp.float32, -bound1, bound1)
    b1 = jax.random.uniform(k2, (hidden_size,), jnp.float32, -bound1, bound1)
    w2 = jax.random.uniform(k3, (hidden_size, OUT_CLASSES), jnp.float32, -bound2, bound2)
    b2 = jax.random.uniform(k4, (OUT_CLASSES,), jnp.float32, -bound2, bound2)
    return w1, b1, w2, b2


def pad_params(w1, b1, w2, b2):
    """Lane-dense, MXU-ready parameter layout for the kernel (one-time cost)."""
    hid = w1.shape[1]
    w1p = jnp.zeros((IN_FEATURES, HID_PAD), jnp.bfloat16)
    w1p = w1p.at[:, :hid].set(w1.astype(jnp.bfloat16))
    b1p = jnp.zeros((1, HID_PAD), jnp.float32).at[0, :hid].set(b1)
    w2p = jnp.zeros((HID_PAD, OUT_PAD), jnp.bfloat16)
    w2p = w2p.at[:hid, :OUT_CLASSES].set(w2.astype(jnp.bfloat16))
    # Large finite negative bias on padded class lanes: exp(logit - max) == 0 there,
    # softmax over the first 10 lanes unchanged, and (unlike -inf) NaN-proof.
    b2p = jnp.full((1, OUT_PAD), NEG_FILL, jnp.float32).at[0, :OUT_CLASSES].set(b2)
    return w1p, b1p, w2p, b2p


def fashion_net_ref(x, w1, b1, w2, b2):
    """Pure-JAX f32 reference matching the PyTorch module."""
    h = jnp.maximum(x @ w1 + b1, 0.0)
    logits = h @ w2 + b2
    return jax.nn.softmax(logits, axis=-1)


if __name__ == "__main__":
    key = jax.random.PRNGKey(0)
    k_x, k_p = jax.random.split(key)

    B = 8  # small batch
    x = jax.random.normal(k_x, (B, IN_FEATURES), dtype=jnp.float32)
    w1, b1, w2, b2 = init_params(k_p)
    w1p, b1p, w2p, b2p = pad_params(w1, b1, w2, b2)

    out = fashion_net_forward(x, w1p, b1p, w2p, b2p)
    out = jax.block_until_ready(out)

    # Sanity: shape, softmax rows sum to ~1 (bf16 output rounding -> 1e-2 tol),
    # and agreement with the f32 reference (bf16 MXU inputs/output -> 3e-2 tol).
    assert out.shape == (B, OUT_CLASSES)
    out_f32 = out.astype(jnp.float32)
    row_sums = jnp.sum(out_f32, axis=1)
    assert bool(jnp.all(jnp.abs(row_sums - 1.0) < 1e-2))
    ref = fashion_net_ref(x, w1, b1, w2, b2)
    assert bool(jnp.all(jnp.abs(out_f32 - ref) < 3e-2))

    print("KERNEL_OK")
</pallas_src>

<mosaic_0001>
module attributes {stable_mosaic.version = 11 : i64} {
  func.func @fashion_net_kernel(%arg0: i32, %arg1: memref<8x784xf32, #tpu.memory_space<vmem>>, %arg2: memref<784x128xbf16, #tpu.memory_space<vmem>>, %arg3: memref<1x128xf32, #tpu.memory_space<vmem>>, %arg4: memref<128x128xbf16, #tpu.memory_space<vmem>>, %arg5: memref<1x128xf32, #tpu.memory_space<vmem>>, %arg6: memref<8x128xbf16, #tpu.memory_space<vmem>>) attributes {dimension_semantics = [#tpu.dimension_semantics<parallel>], iteration_bounds = array<i64: 1>, scalar_prefetch = 0 : i64, scratch_operands = 0 : i64, tpu.core_type = #tpu.core_type<tc>, window_params = [{transform_indices = @transform_0, window_bounds = array<i64: 8, 784>}, {pipeline_mode = #tpu.pipeline_mode<synchronous>, transform_indices = @transform_1, window_bounds = array<i64: 784, 128>}, {pipeline_mode = #tpu.pipeline_mode<synchronous>, transform_indices = @transform_2, window_bounds = array<i64: 1, 128>}, {pipeline_mode = #tpu.pipeline_mode<synchronous>, transform_indices = @transform_3, window_bounds = array<i64: 128, 128>}, {pipeline_mode = #tpu.pipeline_mode<synchronous>, transform_indices = @transform_4, window_bounds = array<i64: 1, 128>}, {transform_indices = @transform_5, window_bounds = array<i64: 8, 128>}]} {
    %c0 = arith.constant 0 : index
    %c0_0 = arith.constant 0 : index
    %0 = vector.load %arg1[%c0, %c0_0] : memref<8x784xf32, #tpu.memory_space<vmem>>, vector<8x784xf32>
    %1 = arith.truncf %0 : vector<8x784xf32> to vector<8x784xbf16>
    %c0_1 = arith.constant 0 : index
    %c0_2 = arith.constant 0 : index
    %2 = vector.load %arg2[%c0_1, %c0_2] : memref<784x128xbf16, #tpu.memory_space<vmem>>, vector<784x128xbf16>
    %cst = arith.constant dense<0.000000e+00> : vector<8x128xf32>
    %3 = tpu.matmul %1, %2, %cst {dimension_numbers = #tpu.dot_dimension_numbers<[1], [0], [0], [1], [0, 0, 1, 1], [], []>} : vector<8x784xbf16>, vector<784x128xbf16>, vector<8x128xf32> -> vector<8x128xf32>
    %c0_3 = arith.constant 0 : index
    %c0_4 = arith.constant 0 : index
    %4 = vector.load %arg3[%c0_3, %c0_4] : memref<1x128xf32, #tpu.memory_space<vmem>>, vector<1x128xf32>
    %5 = vector.broadcast %4 : vector<1x128xf32> to vector<8x128xf32>
    %6 = arith.addf %3, %5 : vector<8x128xf32>
    %cst_5 = arith.constant 0.000000e+00 : f32
    %7 = vector.broadcast %cst_5 : f32 to vector<8x128xf32>
    %8 = arith.maximumf %6, %7 : vector<8x128xf32>
    %9 = arith.truncf %8 : vector<8x128xf32> to vector<8x128xbf16>
    %c0_6 = arith.constant 0 : index
    %c0_7 = arith.constant 0 : index
    %10 = vector.load %arg4[%c0_6, %c0_7] : memref<128x128xbf16, #tpu.memory_space<vmem>>, vector<128x128xbf16>
    %cst_8 = arith.constant dense<0.000000e+00> : vector<8x128xf32>
    %11 = tpu.matmul %9, %10, %cst_8 {dimension_numbers = #tpu.dot_dimension_numbers<[1], [0], [0], [1], [0, 0, 1, 1], [], []>} : vector<8x128xbf16>, vector<128x128xbf16>, vector<8x128xf32> -> vector<8x128xf32>
    %c0_9 = arith.constant 0 : index
    %c0_10 = arith.constant 0 : index
    %12 = vector.load %arg5[%c0_9, %c0_10] : memref<1x128xf32, #tpu.memory_space<vmem>>, vector<1x128xf32>
    %13 = vector.broadcast %12 : vector<1x128xf32> to vector<8x128xf32>
    %14 = arith.addf %11, %13 : vector<8x128xf32>
    %cst_11 = arith.constant dense<0xFF800000> : vector<8xf32>
    %15 = vector.multi_reduction <maximumf>, %14, %cst_11 [1] : vector<8x128xf32> to vector<8xf32>
    %16 = vector.shape_cast %15 : vector<8xf32> to vector<8x1xf32>
    %17 = vector.broadcast %16 : vector<8x1xf32> to vector<8x128xf32>
    %18 = arith.subf %14, %17 : vector<8x128xf32>
    %19 = math.exp %18 : vector<8x128xf32>
    %cst_12 = arith.constant dense<0.000000e+00> : vector<8xf32>
    %20 = vector.multi_reduction <add>, %19, %cst_12 [1] : vector<8x128xf32> to vector<8xf32>
    %21 = vector.shape_cast %20 : vector<8xf32> to vector<8x1xf32>
    %22 = vector.broadcast %21 : vector<8x1xf32> to vector<8x128xf32>
    %23 = arith.divf %19, %22 : vector<8x128xf32>
    %24 = arith.truncf %23 : vector<8x128xf32> to vector<8x128xbf16>
    %c0_13 = arith.constant 0 : index
    %c0_14 = arith.constant 0 : index
    %25 = vector.load %arg6[%c0_13, %c0_14] : memref<8x128xbf16, #tpu.memory_space<vmem>>, vector<8x128xbf16>
    tpu.vector_store %arg6[%c0_13, %c0_14], %24 {strides = array<i32>} : memref<8x128xbf16, #tpu.memory_space<vmem>>, vector<8x128xbf16>,
    return
  }
  func.func @transform_0(%arg0: i32) -> (i32, i32) {
    %c0_i32 = arith.constant 0 : i32
    %c0_i32_0 = arith.constant 0 : i32
    return %arg0, %c0_i32 : i32, i32
  }
  func.func @transform_1(%arg0: i32) -> (i32, i32) {
    %c0_i32 = arith.constant 0 : i32
    %c0_i32_0 = arith.constant 0 : i32
    %c0_i32_1 = arith.constant 0 : i32
    return %c0_i32, %c0_i32_0 : i32, i32
  }
  func.func @transform_2(%arg0: i32) -> (i32, i32) {
    %c0_i32 = arith.constant 0 : i32
    %c0_i32_0 = arith.constant 0 : i32
    %c0_i32_1 = arith.constant 0 : i32
    return %c0_i32, %c0_i32_0 : i32, i32
  }
  func.func @transform_3(%arg0: i32) -> (i32, i32) {
    %c0_i32 = arith.constant 0 : i32
    %c0_i32_0 = arith.constant 0 : i32
    %c0_i32_1 = arith.constant 0 : i32
    return %c0_i32, %c0_i32_0 : i32, i32
  }
  func.func @transform_4(%arg0: i32) -> (i32, i32) {
    %c0_i32 = arith.constant 0 : i32
    %c0_i32_0 = arith.constant 0 : i32
    %c0_i32_1 = arith.constant 0 : i32
    return %c0_i32, %c0_i32_0 : i32, i32
  }
  func.func @transform_5(%arg0: i32) -> (i32, i32) {
    %c0_i32 = arith.constant 0 : i32
    %c0_i32_0 = arith.constant 0 : i32
    return %arg0, %c0_i32 : i32, i32
  }
}

</mosaic_0001>

<bundles_post_ra>
// kernel: tpu_custom_call.1
= control target key start
LH: loop header
LB: loop body
LE: loop exit
PB: predicated region body
PF: predicated region fallthrough
CT: control target
= control target key end

     0   :  { %10 = vsyncpa [#allocation3], 0  ;;  %s1165_s0 = inlined_call_operand.hbm [shape: f32[8,784], index: 0, kind: input, shape index: {}]   ;;  %s1166_s1 = inlined_call_operand.hbm [shape: bf16[784,128], index: 1, kind: input, shape index: {}]   ;;  %s1167_s2 = inlined_call_operand.vmem [shape: f32[1,128], index: 2, kind: input, shape index: {}]   ;;  %s1168_s3 = inlined_call_operand.hbm [shape: bf16[128,128], index: 3, kind: input, shape index: {}]   ;;  %s1169_s4 = inlined_call_operand.vmem [shape: f32[1,128], index: 4, kind: input, shape index: {}]   ;;  %s1170_s5 = inlined_call_operand.hbm [shape: bf16[8,128], index: 5, kind: output, shape index: {}]  }
   0x1   :  { %11 = vsyncpa [#allocation6], 0 }
   0x2   :  { %12 = vsyncpa [#allocation4], 0  ;;  %s1096_s18 = smov [#allocation5]  }
   0x3   :  { %s28_s19 = sshll.u32 %s1096_s18, 4  ;;  %s29_s19 = int_to_ptr.vmem [resolvable:$true] %s28_s19 }
   0x4   :  { %s1018_s20 = scalar_lea.vmem %s29_s19, 6272  ;;  %p1023_p1 = scmp.lt.s32.totalorder %s29_s19, %s29_s19 }
   0x5   :  { %p1019_p0 = scmp.ne.s32.totalorder %s29_s19, %s1018_s20  ;;  %p1024_p2 = scmp.lt.s32.totalorder %s1018_s20, %s1018_s20 }
   0x7   :  { %p1025_p3 = por %p1024_p2, %p1023_p1 }
   0x9   :  { %p1026_p4 = pnand %p1025_p3, %p1019_p0 }
   0xb   :  { %1029 = shalt.err (!%p1026_p4)
}
   0xc   :  { %s1097_s21 = smov 64   ;;  %s1098_s22 = smov 4  }
   0xd   :  { %34 = dma.hbm_to_vmem [thread:$0]  %s1166_s1, 6272, %s29_s19, [#allocation6], %s1097_s21, %s1097_s21, %s1098_s22  }
   0xe   :  { %s1099_s25 = smov [#allocation2]   ;;  %s1100_s27 = smov [#allocation7]  }
   0xf   :  { %s19_s26 = sshll.u32 %s1099_s25, 4  ;;  %s42_s28 = sshll.u32 %s1100_s27, 4  ;;  %s20_s26 = int_to_ptr.vmem [resolvable:$true] %s19_s26  ;;  %s43_s28 = int_to_ptr.vmem [resolvable:$true] %s42_s28 }
  0x10   :  { %s1038_s29 = scalar_lea.vmem %s20_s26, 896  ;;  %p1043_p6 = scmp.lt.s32.totalorder %s20_s26, %s20_s26 }
  0x11   :  { %p1039_p5 = scmp.ne.s32.totalorder %s20_s26, %s1038_s29  ;;  %p1044_p7 = scmp.lt.s32.totalorder %s1038_s29, %s1038_s29 }
  0x13   :  { %p1045_p8 = por %p1044_p7, %p1043_p6 }
  0x15   :  { %p1046_p9 = pnand %p1045_p8, %p1039_p5 }
  0x17   :  { %1049 = shalt.err (!%p1046_p9)
}
  0x18   :  { %22 = dma.hbm_to_vmem [thread:$0]  %s1165_s0, 896, %s20_s26, [#allocation3]  }
  0x19   :  { %s1058_s7 = scalar_lea.vmem %s43_s28, 1024  ;;  %p1063_p11 = scmp.lt.s32.totalorder %s43_s28, %s43_s28 }
  0x1a   :  { %p1059_p10 = scmp.ne.s32.totalorder %s43_s28, %s1058_s7  ;;  %p1064_p12 = scmp.lt.s32.totalorder %s1058_s7, %s1058_s7 }
  0x1c   :  { %p1065_p13 = por %p1064_p12, %p1063_p11 }
  0x1e   :  { %p1066_p0 = pnand %p1065_p13, %p1059_p10 }
  0x20   :  { %1069 = shalt.err (!%p1066_p0)
}
  0x21   :  { %48 = dma.hbm_to_vmem [thread:$0]  %s1168_s3, 1024, %s43_s28, [#allocation6], %s1097_s21, %s1097_s21, %s1098_s22  }
  0x22   :  { %1090 = dma.done.wait [#allocation3], 896  }
  0x23   :  { %1091 = vsyncadd [#allocation3], 4294966400 }
  0x24   :  { %1092 = dma.done.wait [#allocation6], 7296  }
  0x25   :  { %1093 = vsyncadd [#allocation6], 4294960000  ;;  %v949_v0 = vld [vmem:[#allocation5 + $0x78] sm:$0xff]   ;;  %v953_v4 = vld [vmem:[#allocation5 + $0x70] sm:$0xff]   ;;  %v1101_v44 = vmov 0.0   ;;  %vm1102_vm0 = vmmov 0  }
  0x26   :  { %v950_v1 = vld [vmem:[#allocation5 + $0x38] sm:$0xff]   ;;  %838 = vmatprep.subr.bf16.mxu0 %v949_v0  ;;  %v954_v5 = vld [vmem:[#allocation5 + $0x30] sm:$0xff]   ;;  %v957_v8 = vld [vmem:[#allocation5 + $0x68] sm:$0xff]   ;;  %vm474_vm1 = vcmask 130048  }
  0x27   :  { %v951_v2 = vld [vmem:[#allocation5 + $0xf8] sm:$0xff]   ;;  %839 = vmatpush3.bf16.msra.mxu0 %v950_v1  ;;  %v955_v6 = vld [vmem:[#allocation5 + $0xf0] sm:$0xff]   ;;  %v958_v9 = vld [vmem:[#allocation5 + $0x28] sm:$0xff]  }
  0x28   :  { %v952_v3 = vld [vmem:[#allocation5 + $0xb8] sm:$0xff]   ;;  %860 = vmatprep.subr.bf16.mxu1 %v951_v2  ;;  %840 = vmatprep.subr.bf16.mxu0 %v953_v4  ;;  %v956_v7 = vld [vmem:[#allocation5 + $0xb0] sm:$0xff]   ;;  %v959_v10 = vld [vmem:[#allocation5 + $0xe8] sm:$0xff]  }
  0x29   :  { %861 = vmatpush3.bf16.msra.mxu1 %v952_v3  ;;  %v960_v11 = vld [vmem:[#allocation5 + $0xa8] sm:$0xff]   ;;  %v961_v12 = vld [vmem:[#allocation5 + $0x60] sm:$0xff]   ;;  %v965_v16 = vld [vmem:[#allocation5 + $0x58] sm:$0xff]  }
  0x2a   :  { %862 = vmatprep.subr.bf16.mxu1 %v955_v6  ;;  %v962_v13 = vld [vmem:[#allocation5 + $0x20] sm:$0xff]   ;;  %v966_v17 = vld [vmem:[#allocation5 + $0x18] sm:$0xff]   ;;  %v969_v20 = vld [vmem:[#allocation5 + $0x50] sm:$0xff]  }
  0x2b   :  { %841 = vmatpush3.bf16.msra.mxu0 %v954_v5  ;;  %v963_v14 = vld [vmem:[#allocation5 + $0xe0] sm:$0xff]   ;;  %v967_v18 = vld [vmem:[#allocation5 + $0xd8] sm:$0xff]   ;;  %v970_v21 = vld [vmem:[#allocation5 + $0x10] sm:$0xff]  }
  0x2c   :  { %842 = vmatprep.subr.bf16.mxu0 %v957_v8  ;;  %v964_v15 = vld [vmem:[#allocation5 + $0xa0] sm:$0xff]   ;;  %v968_v19 = vld [vmem:[#allocation5 + $0x98] sm:$0xff]   ;;  %v971_v22 = vld [vmem:[#allocation5 + $0xd0] sm:$0xff]  }
  0x2d   :  { %863 = vmatpush3.bf16.msra.mxu1 %v956_v7  ;;  %v972_v23 = vld [vmem:[#allocation5 + $0x90] sm:$0xff]   ;;  %v973_v24 = vld [vmem:[#allocation5 + $0x48] sm:$0xff]   ;;  %v977_v28 = vld [vmem:[#allocation5 + $0x40] sm:$0xff]  }
  0x2e   :  { %864 = vmatprep.subr.bf16.mxu1 %v959_v10  ;;  %v974_v25 = vld [vmem:[#allocation5 + $0x8] sm:$0xff]   ;;  %v978_v29 = vld [vmem:[#allocation5] sm:$0xff]   ;;  %v62_v31 = vld [vmem:[#allocation2 + $0x8] sm:$0xff] }
  0x2f   :  { %843 = vmatpush3.bf16.msra.mxu0 %v958_v9  ;;  %v975_v26 = vld [vmem:[#allocation5 + $0xc8] sm:$0xff]   ;;  %v979_v30 = vld [vmem:[#allocation5 + $0xc0] sm:$0xff]   ;;  %v69_v32 = vpack.c.bf16 %v62_v31, %v62_v31  ;;  %v981_v36 = vld [vmem:[#allocation5 + $0x178] sm:$0xff]  }
  0x30   :  { %844 = vmatprep.subr.bf16.mxu0 %v961_v12  ;;  %v976_v27 = vld [vmem:[#allocation5 + $0x88] sm:$0xff]   ;;  %v980_v33 = vld [vmem:[#allocation5 + $0x80] sm:$0xff]   ;;  %v982_v39 = vld [vmem:[#allocation5 + $0x138] sm:$0xff]  }
  0x31   :  { %865 = vmatpush3.bf16.msra.mxu1 %v960_v11  ;;  %v61_v34 = vld [vmem:[#allocation2] sm:$0xff]  ;;  %v64_v37 = vld [vmem:[#allocation2 + $0x18] sm:$0xff]  ;;  %510 = vmatprep.mubr.bf16.mxu0 %v69_v32  ;;  %v63_v40 = vld [vmem:[#allocation2 + $0x10] sm:$0xff] }
  0x32   :  { %866 = vmatprep.subr.bf16.mxu1 %v963_v14  ;;  %v68_v35 = vpack.c.bf16 %v61_v34, %v61_v34  ;;  %v71_v38 = vpack.c.bf16 %v64_v37, %v64_v37  ;;  %v70_v41 = vpack.c.bf16 %v63_v40, %v63_v40  ;;  %v983_v42 = vld [vmem:[#allocation5 + $0x170] sm:$0xff]   ;;  %v985_v45 = vld [vmem:[#allocation5 + $0x168] sm:$0xff]   ;;  %v987_v47 = vld [vmem:[#allocation5 + $0x160] sm:$0xff]  }
  0x33   :  { %845 = vmatpush3.bf16.msra.mxu0 %v962_v13  ;;  %v984_v43 = vld [vmem:[#allocation5 + $0x130] sm:$0xff]   ;;  %v986_v46 = vld [vmem:[#allocation5 + $0x128] sm:$0xff]   ;;  %v988_v48 = vld [vmem:[#allocation5 + $0x120] sm:$0xff]  }
  0x34   :  { %846 = vmatprep.subr.bf16.mxu0 %v965_v16  ;;  %550 = vmatprep.mubr.bf16.mxu1 %v71_v38  ;;  %v989_v49 = vld [vmem:[#allocation5 + $0x158] sm:$0xff]   ;;  %v991_v51 = vld [vmem:[#allocation5 + $0x150] sm:$0xff]   ;;  %v997_v53 = vld [vmem:[#allocation5 + $0x180] sm:$0xff]  }
  0x35   :  { %867 = vmatpush3.bf16.msra.mxu1 %v964_v15  ;;  %v990_v50 = vld [vmem:[#allocation5 + $0x118] sm:$0xff]   ;;  %v992_v52 = vld [vmem:[#allocation5 + $0x110] sm:$0xff]   ;;  %v993_v55 = vld [vmem:[#allocation5 + $0x148] sm:$0xff]  }
  0x36   :  { %868 = vmatprep.subr.bf16.mxu1 %v967_v18  ;;  %v66_v54 = vld [vmem:[#allocation2 + $0x28] sm:$0xff]  ;;  %v67_v57 = vld [vmem:[#allocation2 + $0x30] sm:$0xff]  ;;  %v994_v59 = vld [vmem:[#allocation5 + $0x108] sm:$0xff]  }
  0x37   :  { %847 = vmatpush3.bf16.msra.mxu0 %v966_v17  ;;  %v73_v56 = vpack.c.bf16 %v66_v54, %v66_v54  ;;  %v74_v58 = vpack.c.bf16 %v67_v57, %v67_v57  ;;  %v995_v60 = vld [vmem:[#allocation5 + $0x140] sm:$0xff]   ;;  %v65_v62 = vld [vmem:[#allocation2 + $0x20] sm:$0xff]  ;;  %v999_v1 = vld [vmem:[#allocation7 + $0x30] sm:$0xff]  }
  0x38   :  { %848 = vmatprep.subr.bf16.mxu0 %v969_v20  ;;  %v996_v61 = vld [vmem:[#allocation5 + $0x100] sm:$0xff]   ;;  %v72_v63 = vpack.c.bf16 %v65_v62, %v65_v62  ;;  %v1000_v2 = vld [vmem:[#allocation7 + $0x28] sm:$0xff]   ;;  %v1001_v3 = vld [vmem:[#allocation7 + $0x20] sm:$0xff]  }
  0x39   :  { %869 = vmatpush3.bf16.msra.mxu1 %v968_v19  ;;  %v998_v0 = vld [vmem:[#allocation7 + $0x38] sm:$0xff]   ;;  %v1003_v5 = vld [vmem:[#allocation7 + $0x10] sm:$0xff]   ;;  %v1004_v6 = vld [vmem:[#allocation7 + $0x8] sm:$0xff]  }
  0x3a   :  { %870 = vmatprep.subr.bf16.mxu1 %v971_v22  ;;  %v1002_v4 = vld [vmem:[#allocation7 + $0x18] sm:$0xff]   ;;  %v1005_v7 = vld [vmem:[#allocation7] sm:$0xff]  }
  0x3b   :  { %849 = vmatpush3.bf16.msra.mxu0 %v970_v21  ;;  %v778_v21 = vld [vmem:[%s1167_s2] ss:$0 sm:$0xff]  ;;  %s1103_s2 = smov [#allocation8]  }
  0x3c   :  { %850 = vmatprep.subr.bf16.mxu0 %v973_v24  ;;  %v829_v34 = vld [vmem:[%s1169_s4] ss:$0 sm:$0xff]  ;;  %s768_s11 = sshll.u32 %s1103_s2, 4  ;;  %s769_s11 = int_to_ptr.vmem [resolvable:$true] %s768_s11 }
  0x3d   :  { %871 = vmatpush3.bf16.msra.mxu1 %v972_v23  ;;  %s1070_s4 = scalar_lea.vmem %s769_s11, 64  ;;  %p1075_p2 = scmp.lt.s32.totalorder %s769_s11, %s769_s11 }
  0x3e   :  { %872 = vmatprep.subr.bf16.mxu1 %v975_v26  ;;  %p1071_p1 = scmp.ne.s32.totalorder %s769_s11, %s1070_s4  ;;  %p1076_p3 = scmp.lt.s32.totalorder %s1070_s4, %s1070_s4 }
  0x3f   :  { %851 = vmatpush3.bf16.msra.mxu0 %v974_v25 }
  0x40   :  { %852 = vmatprep.subr.bf16.mxu0 %v977_v28  ;;  %p1077_p4 = por %p1076_p3, %p1075_p2 }
  0x41   :  { %873 = vmatpush3.bf16.msra.mxu1 %v976_v27 }
  0x42   :  { %874 = vmatprep.subr.bf16.mxu1 %v979_v30  ;;  %p1078_p5 = pnand %p1077_p4, %p1071_p1 }
  0x43   :  { %853 = vmatpush3.bf16.msra.mxu0 %v978_v29 }
  0x44   :  { %882 = vmatprep.subr.bf16.mxu0 %v981_v36 }
  0x45   :  { %875 = vmatpush3.bf16.msra.mxu1 %v980_v33 }
  0x46   :  { %511 = vmatmul.mubr.bf16.vlgmr.msra.gmra.mxu0 %v68_v35  ;;  %915 = vmatprep.subr.bf16.mxu1 %v1101_v44 }
  0x47   :  { %883 = vmatpush3.bf16.msra.mxu0 %v982_v39  ;;  %590 = vmatprep.mubr.bf16.mxu0 %v73_v56 }
  0x48   :  { %551 = vmatmul.mubr.bf16.vlgmr.msra.gmra.mxu1 %v70_v41  ;;  %884 = vmatprep.subr.bf16.mxu0 %v983_v42 }
  0x49   :  { %917 = vmatprep.mubr.msk.bf16.mxu1 %vm1102_vm0, %v1101_v44  ;;  %916 = vmatpush3.bf16.msra.mxu1 %v997_v53 }
  0x4a   :  { %921 = vmatprep.subr.bf16.mxu1 %v1101_v44 }
  0x4b   :  { %885 = vmatpush3.bf16.msra.mxu0 %v984_v43 }
  0x4c   :  { %886 = vmatprep.subr.bf16.mxu0 %v985_v45 }
  0x4f   :  { %887 = vmatpush3.bf16.msra.mxu0 %v986_v46 }
  0x50   :  { %888 = vmatprep.subr.bf16.mxu0 %v987_v47  ;;  %918 = vmatmul.mubr.msk.bf16.vlgmr.msra.gmra.mxu1 %vm474_vm1, %v74_v58 }
  0x51   :  { %937 = vmatprep.mubr.msk.bf16.mxu1 %vm1102_vm0, %v1101_v44  ;;  %922 = vmatpush3.bf16.msra.mxu1 %v998_v0 }
  0x52   :  { %923 = vmatprep.subr.bf16.mxu1 %v1101_v44 }
  0x53   :  { %889 = vmatpush3.bf16.msra.mxu0 %v988_v48 }
  0x54   :  { %890 = vmatprep.subr.bf16.mxu0 %v989_v49 }
  0x55   :  { %924 = vmatpush3.bf16.msra.mxu1 %v999_v1 }
  0x56   :  { %925 = vmatprep.subr.bf16.mxu1 %v1101_v44 }
  0x57   :  { %891 = vmatpush3.bf16.msra.mxu0 %v990_v50 }
  0x58   :  { %892 = vmatprep.subr.bf16.mxu0 %v991_v51 }
  0x59   :  { %926 = vmatpush3.bf16.msra.mxu1 %v1000_v2 }
  0x5a   :  { %927 = vmatprep.subr.bf16.mxu1 %v1101_v44 }
  0x5b   :  { %893 = vmatpush3.bf16.msra.mxu0 %v992_v52 }
  0x5c   :  { %894 = vmatprep.subr.bf16.mxu0 %v993_v55 }
  0x5d   :  { %928 = vmatpush3.bf16.msra.mxu1 %v1001_v3 }
  0x5e   :  { %929 = vmatprep.subr.bf16.mxu1 %v1101_v44 }
  0x5f   :  { %895 = vmatpush3.bf16.msra.mxu0 %v994_v59 }
  0x60   :  { %896 = vmatprep.subr.bf16.mxu0 %v995_v60 }
  0x61   :  { %930 = vmatpush3.bf16.msra.mxu1 %v1002_v4 }
  0x62   :  { %931 = vmatprep.subr.bf16.mxu1 %v1101_v44 }
  0x63   :  { %897 = vmatpush3.bf16.msra.mxu0 %v996_v61 }
  0x65   :  { %932 = vmatpush3.bf16.msra.mxu1 %v1003_v5 }
  0x66   :  { %591 = vmatmul.mubr.bf16.vlgmr.msra.gmra.mxu0 %v72_v63  ;;  %933 = vmatprep.subr.bf16.mxu1 %v1101_v44 }
  0x69   :  { %934 = vmatpush3.bf16.msra.mxu1 %v1004_v6 }
  0x6a   :  { %935 = vmatprep.subr.bf16.mxu1 %v1101_v44 }
  0x6d   :  { %936 = vmatpush3.bf16.msra.mxu1 %v1005_v7 }
 0x106   :  { %v854_v8 = vpop.f32.mrf.mxu0 }
 0x108   :  { %v855_v9 = vpop.f32.mrf.mxu0  ;;  %v876_v10 = vpop.f32.mrf.mxu1 }
 0x109   :  { %v856_v20 = vadd.f32 %v855_v9, %v854_v8 }
 0x10a   :  { %v857_v11 = vpop.f32.mrf.mxu0  ;;  %v877_v12 = vpop.f32.mrf.mxu1 }
 0x10b   :  { %v513_v22 = vadd.f32 %v856_v20, %v778_v21  ;;  %v878_v23 = vadd.f32 %v877_v12, %v876_v10 }
 0x10c   :  { %v858_v13 = vpop.f32.mrf.mxu0  ;;  %v879_v14 = vpop.f32.mrf.mxu1 }
 0x10d   :  { %v553_v26 = vadd.f32 %v878_v23, %v513_v22 }
 0x10e   :  { %v880_v15 = vpop.f32.mrf.mxu1 }
 0x110   :  { %v632_v16 = vpop.f32.mrf.mxu1 }
 0x112   :  { %v919_v17 = vpop.f32.mrf.mxu1 }
 0x114   :  { %v635_v18 = vpop.f32.mrf.mxu1 }
 0x116   :  { %v920_v19 = vpop.f32.mrf.mxu1 }
 0x126   :  { %v898_v24 = vpop.f32.mrf.mxu0 }
 0x128   :  { %v899_v25 = vpop.f32.mrf.mxu0 }
 0x129   :  { %v900_v27 = vadd.f32 %v899_v25, %v898_v24 }
 0x12a   :  { %v901_v28 = vpop.f32.mrf.mxu0 }
 0x12b   :  { %v593_v29 = vadd.f32 %v900_v27, %v553_v26 }
 0x12c   :  { %v902_v30 = vpop.f32.mrf.mxu0 }
 0x12d   :  { %v633_v31 = vadd.f32 %v632_v16, %v593_v29 }
 0x12f   :  { %v638_v32 = vmax.f32 %v633_v31, 0.0 }
 0x131   :  { %v639_v33 = vpack.c.bf16 %v638_v32, %v638_v32 }
 0x133   :  { %938 = vmatmul.mubr.bf16.vlgmr.msra.gmra.mxu1 %v639_v33 }
 0x1f3   :  { %v745_v35 = vpop.f32.mrf.mxu1 }
 0x1f4   :  { %v746_v36 = vadd.f32 %v829_v34, %v745_v35 }
 0x1f5   :  { %v939_v37 = vpop.f32.mrf.mxu1 }
 0x1f6   :  { %751 = vmax.xlane.f32.xlu0 %v746_v36 }
 0x1f7   :  { %v748_v38 = vpop.f32.mrf.mxu1 }
 0x1f9   :  { %v940_v39 = vpop.f32.mrf.mxu1 }
 0x27f   :  { %v752_v40 = vpop.xlane.xlu0 %751 }
 0x280   :  { %v753_v41 = vsub.f32 %v746_v36, %v752_v40 }
 0x282   :  { %v754_v42 = vmul.f32 1.442695, %v753_v41 }
 0x284   :  { %1006 = vpow2.f32 %v754_v42 }
 0x291   :  { %v1007_v43 = vpop.eup %1006 }
 0x292   :  { %756 = vadd.xlane.f32.xlu0 %v1007_v43 }
 0x31b   :  { %v757_v44 = vpop.xlane.xlu0 %756 }
 0x31c   :  { %1008 = vrcp.f32 %v757_v44 }
 0x329   :  { %v1009_v45 = vpop.eup %1008 }
 0x32a   :  { %v759_v46 = vmul.f32 %v1009_v45, %v1007_v43 }
 0x32c   :  { %v760_v47 = vpack.c.bf16 %v759_v46, %v759_v46 }
 0x32e   :  { %761 = vst [vmem:[#allocation8] sm:$0xf] %v760_v47 }
 0x32f   :  { %1081 = shalt.err (!%p1078_p5)
}
 0x330   :  { %771 = dma.vmem_to_hbm [thread:$0]  %s769_s11, 64, %s1170_s5, [#allocation4]  }
 0x331   :  { %1094 = dma.done.wait [#allocation4], 64  }
 0x332   :  { %1095 = vsyncadd [#allocation4], 4294967232 }
 0x333   :  { %775 = vsyncpa [#allocation3], 1 }
 0x334   :  { %776 = vsyncpa [#allocation6], 1 }
 0x335   :  { %777 = vsyncpa [#allocation4], 1 }

</bundles_post_ra>
